<compile_context>
chip_gen: v6e
topology: v6e:2x2x1
jax: 0.10.0
libtpu: 0.0.40
codegen_flags: <defaults>
</compile_context>

<pallas_src>
import functools
import math

import jax
import jax.numpy as jnp
from jax import lax
from jax.experimental import pallas as pl
from jax.experimental.pallas import tpu as pltpu


# ----------------------------- kernels --------------------------------------


def _f2s_split_kernel(x_ref, out_ref, *, k, tile_c, scale):
    """Channel-tiled path: each output block is a 128-lane-aligned slice of the
    2K channel axis.  A block is purely cos, purely sin, or (at most one per
    channel sweep) straddles the boundary."""
    c0 = pl.program_id(1) * tile_c                       # int32 scalar (traced)
    x = x_ref[...]                                       # (tile_r, 1) f32
    lane = lax.broadcasted_iota(jnp.int32, (1, tile_c), 1)

    pure_cos = (c0 + tile_c) <= k
    pure_sin = c0 >= k

    @pl.when(pure_cos)
    def _():
        th = (c0 + lane).astype(jnp.float32) * scale     # (1, tile_c)
        out_ref[...] = jnp.cos(x * th)                   # VPU outer product

    @pl.when(pure_sin)
    def _():
        th = (c0 - k + lane).astype(jnp.float32) * scale
        out_ref[...] = jnp.sin(x * th)

    if k % tile_c != 0:
        # Exactly one block per sweep straddles the cos/sin boundary: exact
        # per-lane select (both polynomials, but only for this block).
        @pl.when(jnp.logical_not(jnp.logical_or(pure_cos, pure_sin)))
        def _():
            g = c0 + lane
            idx = jnp.where(g < k, g, g - k)
            kt = x * (idx.astype(jnp.float32) * scale)
            out_ref[...] = jnp.where(g < k, jnp.cos(kt), jnp.sin(kt))


def _f2s_full_kernel(x_ref, out_ref, *, k, scale):
    """Fallback path (2K not a multiple of 128, or K < 128): one full-width
    channel block, cos/sin halves stored directly via static slices."""
    x = x_ref[...]                                       # (tile_r, 1) f32
    lane = lax.broadcasted_iota(jnp.int32, (1, k), 1)
    th = lane.astype(jnp.float32) * scale                # (1, k)
    kt = x * th                                          # (tile_r, k)
    out_ref[:, 0:k] = jnp.cos(kt)
    out_ref[:, k:2 * k] = jnp.sin(kt)


# ----------------------------- tiling helpers --------------------------------


def _divisors(n):
    out = set()
    d = 1
    while d * d <= n:
        if n % d == 0:
            out.add(d)
            out.add(n // d)
        d += 1
    return sorted(out)


def _pick_tile_r(rows, tile_c, grid_c, target_bytes, max_bytes, min_steps=8):
    """Pick a sublane-legal row tile.  Prefer exact divisors of `rows`, blocks
    near `target_bytes`, and enough total grid steps for pipelining + the two
    v7x TensorCores.  Returns (tile_r, divides_exactly)."""
    bytes_per_row = tile_c * 4
    target_rows = max(1, target_bytes // bytes_per_row)
    max_rows = max(1, max_bytes // bytes_per_row)

    legal = [d for d in _divisors(rows)
             if (d % 8 == 0 or d == rows) and d <= max_rows]

    def choose(pool):
        under = [d for d in pool if d <= target_rows]
        return max(under) if under else min(pool)

    if legal:
        for steps_req in (min_steps, 2, 1):
            pool = [d for d in legal if (rows // d) * grid_c >= steps_req]
            if pool:
                return choose(pool), True

    # No legal divisor fits VMEM (e.g. huge prime R): use a non-dividing tile;
    # Pallas masks the partial edge block.
    t = max(8, (min(max_rows, target_rows) // 8) * 8)
    return t, False


# ----------------------------- wrapper ---------------------------------------


def float2spectrum(x, channels, *, tile_r=None, tile_c=None,
                   target_tile_bytes=6 * 2**20):
    """(N, M) float -> (N, M, 2*(channels//2)) float32, matching the torch module."""
    n, m = x.shape
    k = int(channels) // 2
    assert k >= 1, "channels must be >= 2"
    c_total = 2 * k
    rows = n * m
    # torch.linspace(0, 2*pi, k)[i] == i * 2*pi/(k-1); k == 1 -> [0.0]
    scale = (2.0 * math.pi / (k - 1)) if k > 1 else 0.0

    x2 = x.astype(jnp.float32).reshape(rows, 1)          # rows on sublanes

    # ---- channel tiling ------------------------------------------------------
    split = (c_total % 128 == 0) and (k >= 128)
    if split:
        if tile_c is None:
            if k % 128 == 0:
                for cand in (512, 256, 128):              # blocks never straddle
                    if k % cand == 0:
                        tile_c = cand
                        break
            else:
                tile_c = 128                              # one straddling block
        assert tile_c % 128 == 0 and c_total % tile_c == 0
        grid_c = c_total // tile_c
    else:
        tile_c = c_total                                  # full-width block
        grid_c = 1

    # ---- VMEM budget (v7x-safe) ---------------------------------------------
    try:
        vmem_cap = int(pltpu.get_tpu_info().vmem_capacity_bytes)
    except Exception:
        vmem_cap = 64 * 2**20                             # conservative (v7x/TC)
    vmem_ceiling = max(32 * 2**20, (vmem_cap * 3) // 4)
    max_block_bytes = vmem_ceiling // 6                   # 2x dbl-buf + temps

    # ---- row tiling ----------------------------------------------------------
    if tile_r is None:
        tile_r, divides = _pick_tile_r(
            rows, tile_c, grid_c,
            min(target_tile_bytes, max_block_bytes), max_block_bytes)
    else:
        divides = (rows % tile_r == 0)
    grid_r = rows // tile_r if divides else pl.cdiv(rows, tile_r)

    if split:
        kernel = functools.partial(_f2s_split_kernel, k=k, tile_c=tile_c,
                                   scale=scale)
    else:
        kernel = functools.partial(_f2s_full_kernel, k=k, scale=scale)

    out2 = pl.pallas_call(
        kernel,
        out_shape=jax.ShapeDtypeStruct((rows, c_total), jnp.float32),
        grid_spec=pltpu.PrefetchScalarGridSpec(
            num_scalar_prefetch=0,
            # channel axis innermost: the x block index is constant across it,
            # so its (tiny) DMA is not re-issued.
            grid=(grid_r, grid_c),
            in_specs=[pl.BlockSpec((tile_r, 1), lambda i, c: (i, 0))],
            out_specs=pl.BlockSpec((tile_r, tile_c), lambda i, c: (i, c)),
        ),
        compiler_params=pltpu.CompilerParams(
            dimension_semantics=("parallel", "parallel"),
            vmem_limit_bytes=int(vmem_ceiling),
        ),
    )(x2)

    return out2.reshape(n, m, c_total)                    # free (same layout)


# ----------------------------- reference & test -------------------------------


def _reference(x, channels):
    k = int(channels) // 2
    thida = jnp.linspace(0.0, 2.0 * math.pi, k, dtype=jnp.float32)
    kt = jnp.einsum("nm,k->nmk", x.astype(jnp.float32), thida)
    return jnp.concatenate([jnp.cos(kt), jnp.sin(kt)], axis=-1)


if __name__ == "__main__":
    key = jax.random.PRNGKey(0)
    N, M = 16, 16
    x = jax.random.normal(key, (N, M), dtype=jnp.float32)

    # 1) Small channels (2K < 128): full-width fallback path, sliced stores.
    # 2) K multiple of 128: lane-aligned split path, pure cos/sin blocks.
    # 3) K = 192 (only 2K % 128 == 0): split path with one straddling block.
    for ch in (8, 256, 384):
        out = jax.block_until_ready(float2spectrum(x, ch))
        ref = _reference(x, ch)
        assert out.shape == (N, M, 2 * (ch // 2)), (ch, out.shape)
        assert jnp.allclose(out, ref, atol=5e-5, rtol=1e-5), f"mismatch ch={ch}"

    print("KERNEL_OK")
</pallas_src>

<mosaic_0001>
module attributes {stable_mosaic.version = 11 : i64} {
  func.func @_f2s_full_kernel(%arg0: i32, %arg1: i32, %arg2: memref<32x1xf32, #tpu.memory_space<vmem>>, %arg3: memref<32x8xf32, #tpu.memory_space<vmem>>) attributes {dimension_semantics = [#tpu.dimension_semantics<parallel>, #tpu.dimension_semantics<parallel>], iteration_bounds = array<i64: 8, 1>, scalar_prefetch = 0 : i64, scratch_operands = 0 : i64, tpu.core_type = #tpu.core_type<tc>, window_params = [{transform_indices = @transform_0, window_bounds = array<i64: 32, 1>}, {transform_indices = @transform_1, window_bounds = array<i64: 32, 8>}]} {
    %c0 = arith.constant 0 : index
    %c0_0 = arith.constant 0 : index
    %0 = vector.load %arg2[%c0, %c0_0] : memref<32x1xf32, #tpu.memory_space<vmem>>, vector<32x1xf32>
    %1 = tpu.iota {dimensions = array<i32: 1>} : vector<1x4xi32>
    %2 = arith.sitofp %1 : vector<1x4xi32> to vector<1x4xf32>
    %cst = arith.constant 2.09439516 : f32
    %3 = vector.broadcast %cst : f32 to vector<1x4xf32>
    %4 = arith.mulf %2, %3 : vector<1x4xf32>
    %5 = vector.broadcast %0 : vector<32x1xf32> to vector<32x4xf32>
    %6 = vector.broadcast %4 : vector<1x4xf32> to vector<32x4xf32>
    %7 = arith.mulf %5, %6 : vector<32x4xf32>
    %8 = math.cos %7 : vector<32x4xf32>
    %c0_1 = arith.constant 0 : index
    %c0_2 = arith.constant 0 : index
    %9 = vector.load %arg3[%c0_1, %c0_2] : memref<32x8xf32, #tpu.memory_space<vmem>>, vector<32x4xf32>
    tpu.vector_store %arg3[%c0_1, %c0_2], %8 {strides = array<i32>} : memref<32x8xf32, #tpu.memory_space<vmem>>, vector<32x4xf32>,
    %10 = math.sin %7 : vector<32x4xf32>
    %c0_3 = arith.constant 0 : index
    %c4 = arith.constant 4 : index
    %11 = vector.load %arg3[%c0_3, %c4] : memref<32x8xf32, #tpu.memory_space<vmem>>, vector<32x4xf32>
    tpu.vector_store %arg3[%c0_3, %c4], %10 {strides = array<i32>} : memref<32x8xf32, #tpu.memory_space<vmem>>, vector<32x4xf32>,
    return
  }
  func.func @transform_0(%arg0: i32, %arg1: i32) -> (i32, i32) {
    %c0_i32 = arith.constant 0 : i32
    %c0_i32_0 = arith.constant 0 : i32
    return %arg0, %c0_i32 : i32, i32
  }
  func.func @transform_1(%arg0: i32, %arg1: i32) -> (i32, i32) {
    %c0_i32 = arith.constant 0 : i32
    return %arg0, %arg1 : i32, i32
  }
}

</mosaic_0001>

<bundles_post_ra>
// kernel: tpu_custom_call.1
= control target key start
LH: loop header
LB: loop body
LE: loop exit
PB: predicated region body
PF: predicated region fallthrough
CT: control target
= control target key end

     0   :  { %s1252_s6 = smov 0   ;;  %s1254_s7 = smov 0   ;;  %s1614_s0 = inlined_call_operand.vmem [shape: f32[256,1], index: 0, kind: input, shape index: {}]   ;;  %s1615_s1 = inlined_call_operand.vmem [shape: f32[256,8], index: 1, kind: output, shape index: {}]  }
   0x1   :  { %s1256_s8 = smov 0  }
   0x2 LB: > { %s23_s9 = sadd.s32 1, %s1228_s7  ;;  %p1105_p0 = scmp.ge.s32.totalorder %s1232_s8, 1  ;;  %s1232_s8 = sphi %s1256_s8, %s11_s8   ;;  %s1228_s7 = sphi %s1254_s7, %s1623_s7   ;;  %s1224_s6 = sphi %s1252_s6, %s1622_s6  }
   0x3   : > { %p25_p1 = scmp.ge.s32.totalorder %s23_s9, 8  ;;  %p102_p2 = scmp.lt.s32.totalorder %s1232_s8, 9 }
   0x5   : > { %s1625_s9 = smov (%p25_p1, %s23_s9), 0  ;;  %p103_p3 = pnand %p1105_p0, %p102_p2 }
   0x6   : > { %s1106_s10 = sshll.u32 (!%p103_p3), %s1224_s6, 2  ;;  %s1241_s18 = smov (!%p103_p3), 4  }
   0x7   : > { %106 = sbr.rel (%p103_p3) target bundleno = 394 (0x18a), region = 24  ;;  %p126_p4 = scmp.lt.s32.totalorder (!%p103_p3), %s1106_s10, 31 }
   0xc   : > { %v1234_v0 = vmov 0   ;;  %s1627_s10 = smov (!%p126_p4, %s1106_s10), 31  ;;  %v144_v5 = vlaneseq  ;;  %v1235_v49 = vmov 683565275   ;;  %v1236_v51 = vmov 2475754826  }
   0xd   : > { %1193 = vset.pattern.permute.xlu1 %v1234_v0  ;;  %1192 = vset.pattern.permute.xlu0 %v1234_v0  ;;  %s1107_s11 = sshll.u32 %s1627_s10, 3  ;;  %v1237_v53 = vmov 2131351028   ;;  %v1238_v55 = vmov 2102212464  }
   0xe   : > { %s129_s14 = scalar_lea.vmem %s1614_s0, %s1107_s11  ;;  %v145_v6 = vand.u32 127, %v144_v5  ;;  %v1239_v57 = vmov 920167782   ;;  %s1556_s17 = scalar_lea.vmem %s1615_s1, %s1107_s11 }
   0xf   : > { %v142_v1 = vld [vmem:[%s129_s14 + $0x10] sm:$0xff]  ;;  %v140_v2 = vld [vmem:[%s129_s14] sm:$0xff]  ;;  %v143_v3 = vld [vmem:[%s129_s14 + $0x18] sm:$0xff] }
  0x10   : > { %160 = vperm.xlu1 %1193, %v142_v1   ;;  %150 = vperm.xlu0 %1192, %v140_v2   ;;  %v141_v4 = vld [vmem:[%s129_s14 + $0x8] sm:$0xff]  ;;  %v146_v7 = vcvt.s32.f32 %v145_v6  ;;  %v1240_v1 = vmov 1326507024  }
  0x12   : > { %v147_v8 = vmul.f32 2.0943952, %v146_v7 }
  0x14   : > { %165 = vperm.xlu1 %1193, %v143_v3   ;;  %155 = vperm.xlu0 %1192, %v141_v4  }
  0x8b   : > { %v161_v9 = vpop.permute.xlu1 %160  ;;  %v151_v10 = vpop.permute.xlu0 %150 }
  0x8c   : > { %v1278_v11 = vmul.f32 %v161_v9, %v147_v8  ;;  %v1280_v12 = vmul.f32 %v151_v10, %v147_v8 }
  0x8e   : > { %v378_v13 = vand.u32 2147483647, %v1278_v11  ;;  %v381_v14 = vand.u32 2139095040, %v1278_v11  ;;  %v172_v15 = vand.u32 2147483647, %v1280_v12  ;;  %v175_v16 = vand.u32 2139095040, %v1280_v12 }
  0x8f   : > { %v166_v17 = vpop.permute.xlu1 %165  ;;  %v156_v18 = vpop.permute.xlu0 %155 }
  0x90   : > { %v382_v19 = vshrl.u32 %v381_v14, 23  ;;  %v385_v20 = vand.u32 8388607, %v378_v13  ;;  %v179_v21 = vand.u32 8388607, %v172_v15  ;;  %v1290_v22 = vmul.f32 %v166_v17, %v147_v8 }
  0x91   : > { %v176_v23 = vshrl.u32 %v175_v16, 23  ;;  %v1292_v24 = vmul.f32 %v156_v18, %v147_v8 }
  0x92   : > { %v1118_v25 = vadd.s32 4294967169, %v382_v19  ;;  %v481_v26 = vand.u32 2147483647, %v1290_v22  ;;  %v386_v27 = vor.u32 8388608, %v385_v20  ;;  %v484_v29 = vand.u32 2139095040, %v1290_v22 }
  0x93   : > { %v1110_v28 = vadd.s32 4294967169, %v176_v23  ;;  %v180_v31 = vor.u32 8388608, %v179_v21  ;;  %v278_v35 = vand.u32 2139095040, %v1292_v24  ;;  %v275_v36 = vand.u32 2147483647, %v1292_v24 }
  0x94   : > { %v388_v30 = vadd.s32 1, %v1118_v25  ;;  %v485_v33 = vshrl.u32 %v484_v29, 23  ;;  %v1298_v34 = vand.u32 8388607, %v481_v26  ;;  %v1302_v38 = vshll.u32 %v386_v27, 8 }
  0x95   : > { %v182_v32 = vadd.s32 1, %v1110_v28  ;;  %v1304_v43 = vshll.u32 %v180_v31, 8  ;;  %v1309_v47 = vshrl.u32 %v278_v35, 23 }
  0x96   : > { %vm389_vm0 = vcmp.gt.s32.totalorder %v388_v30, 0  ;;  %v1122_v39 = vadd.s32 4294967169, %v485_v33  ;;  %v489_v46 = vor.u32 8388608, %v1298_v34 }
  0x97   : > { %v390_v37 = vsel %vm389_vm0, %v388_v30, 0  ;;  %vm183_vm1 = vcmp.gt.s32.totalorder %v182_v32, 0 }
  0x98   : > { %v391_v40 = vshrl.u32 %v390_v37, 5  ;;  %v392_v41 = vand.u32 31, %v390_v37  ;;  %v184_v42 = vsel %vm183_vm1, %v182_v32, 0  ;;  %v1316_v59 = vadd.s32 1, %v1122_v39 }
  0x99   : > { %v1306_v44 = vshrl.u32 %v184_v42, 5  ;;  %v186_v45 = vand.u32 31, %v184_v42 }
  0x9a   : > { %v393_v48 = vsub.s32 32, %v392_v41  ;;  %v395_v50 = vshll.u32 %v1235_v49, %v392_v41  ;;  %v398_v52 = vshll.u32 %v1236_v51, %v392_v41  ;;  %v401_v54 = vshll.u32 %v1237_v53, %v392_v41 }
  0x9b   : > { %v404_v56 = vshll.u32 %v1238_v55, %v392_v41  ;;  %v407_v58 = vshll.u32 %v1239_v57, %v392_v41  ;;  %vm410_vm2 = vcmp.lt.s32.totalorder %v391_v40, 1  ;;  %vm411_vm3 = vcmp.lt.s32.totalorder %v391_v40, 2 }
  0x9c   : > { %v394_v60 = vshrl.u32 %v1235_v49, %v393_v48  ;;  %v396_v61 = vshrl.u32 %v1236_v51, %v393_v48  ;;  %v399_v62 = vshrl.u32 %v1237_v53, %v393_v48  ;;  %v402_v63 = vshrl.u32 %v1238_v55, %v393_v48 }
  0x9d   : > { %v405_v0 = vshrl.u32 %v1239_v57, %v393_v48  ;;  %v408_v2 = vshrl.u32 %v1240_v1, %v393_v48  ;;  %vm412_vm4 = vcmp.lt.s32.totalorder %v391_v40, 3  ;;  %v187_v6 = vsub.s32 32, %v186_v45 }
  0x9e   : > { %v397_v3 = vor.u32 %v396_v61, %v395_v50  ;;  %v400_v4 = vor.u32 %v399_v62, %v398_v52  ;;  %v403_v5 = vor.u32 %v402_v63, %v401_v54  ;;  %vm413_vm5 = vcmp.lt.s32.totalorder %v391_v40, 4 }
  0x9f   : > { %v406_v7 = vor.u32 %v405_v0, %v404_v56  ;;  %v409_v8 = vor.u32 %v408_v2, %v407_v58  ;;  %v189_v9 = vshll.u32 %v1235_v49, %v186_v45  ;;  %v192_v21 = vshll.u32 %v1236_v51, %v186_v45 }
  0xa0   : > { %v414_v10 = vsel %vm410_vm2, %v394_v60, %v397_v3  ;;  %v415_v14 = vsel %vm413_vm5, %v403_v5, 2102212464  ;;  %v418_v16 = vsel %vm410_vm2, %v397_v3, %v400_v4  ;;  %v422_v17 = vsel %vm410_vm2, %v400_v4, %v403_v5 }
  0xa1   : > { %v416_v18 = vsel %vm412_vm4, %v400_v4, %v415_v14  ;;  %v419_v19 = vsel %vm413_vm5, %v406_v7, 920167782  ;;  %v423_v20 = vsel %vm413_vm5, %v409_v8, 1326507024  ;;  %v188_v27 = vshrl.u32 %v1235_v49, %v187_v6 }
  0xa2   : > { %v420_v23 = vsel %vm412_vm4, %v403_v5, %v419_v19  ;;  %v424_v25 = vsel %vm412_vm4, %v406_v7, %v423_v20  ;;  %v190_v28 = vshrl.u32 %v1236_v51, %v187_v6  ;;  %v417_v29 = vsel %vm411_vm3, %v414_v10, %v416_v18 }
  0xa3   : > { %v421_v30 = vsel %vm411_vm3, %v418_v16, %v420_v23  ;;  %v425_v31 = vsel %vm411_vm3, %v422_v17, %v424_v25  ;;  %v193_v32 = vshrl.u32 %v1237_v53, %v187_v6  ;;  %v195_v48 = vshll.u32 %v1237_v53, %v186_v45 }
  0xa4   : > { %v1339_v33 = vmul.u32.u64.low %v1302_v38, %v425_v31  ;;  %v1340_v35 = vmul.u32.u64.high %v1302_v38, %v425_v31, %v1339_v33  ;;  %v1343_v37 = vmul.u32.u64.low %v1302_v38, %v421_v30  ;;  %v1344_v39 = vmul.u32.u64.high %v1302_v38, %v421_v30, %v1343_v37 }
  0xa5   : > { %v191_v41 = vor.u32 %v190_v28, %v189_v9  ;;  %v194_v42 = vor.u32 %v193_v32, %v192_v21  ;;  %v196_v50 = vshrl.u32 %v1238_v55, %v187_v6  ;;  %v433_v40 = vmul.u32 %v1302_v38, %v417_v29 }
  0xa6   : > { %v198_v52 = vshll.u32 %v1238_v55, %v186_v45  ;;  %v199_v54 = vshrl.u32 %v1239_v57, %v187_v6  ;;  %v202_v56 = vshrl.u32 %v1240_v1, %v187_v6  ;;  %v201_v60 = vshll.u32 %v1239_v57, %v186_v45 }
  0xa7   : > { %v197_v58 = vor.u32 %v196_v50, %v195_v48  ;;  %vm204_vm6 = vcmp.lt.s32.totalorder %v1306_v44, 1  ;;  %vm205_vm7 = vcmp.lt.s32.totalorder %v1306_v44, 2  ;;  %vm435_vm8 = vc.u32 %v1340_v35, %v1343_v37 }
  0xa8   : > { %v436_v61 = vadd.s32 1, %v1344_v39  ;;  %v200_v62 = vor.u32 %v199_v54, %v198_v52  ;;  %vm206_vm9 = vcmp.lt.s32.totalorder %v1306_v44, 3  ;;  %v203_v38 = vor.u32 %v202_v56, %v201_v60 }
  0xa9   : > { %vm207_vm10 = vcmp.lt.s32.totalorder %v1306_v44, 4  ;;  %v208_v63 = vsel %vm204_vm6, %v188_v27, %v191_v41  ;;  %v212_v0 = vsel %vm204_vm6, %v191_v41, %v194_v42  ;;  %v216_v4 = vsel %vm204_vm6, %v194_v42, %v197_v58 }
  0xaa   : > { %v437_v2 = vsel %vm435_vm8, %v436_v61, %v1344_v39  ;;  %v209_v45 = vsel %vm207_vm10, %v197_v58, 2102212464  ;;  %v213_v3 = vsel %vm207_vm10, %v200_v62, 920167782  ;;  %v217_v8 = vsel %vm207_vm10, %v203_v38, 1326507024 }
  0xab   : > { %v438_v5 = vadd.s32 %v437_v2, %v433_v40  ;;  %v210_v6 = vsel %vm206_vm9, %v194_v42, %v209_v45  ;;  %v214_v7 = vsel %vm206_vm9, %v197_v58, %v213_v3  ;;  %v218_v14 = vsel %vm206_vm9, %v200_v62, %v217_v8 }
  0xac   : > { %v211_v9 = vsel %vm205_vm7, %v208_v63, %v210_v6  ;;  %v215_v10 = vsel %vm205_vm7, %v212_v0, %v214_v7  ;;  %vm492_vm11 = vcmp.gt.s32.totalorder %v1316_v59, 0  ;;  %v219_v17 = vsel %vm205_vm7, %v216_v4, %v218_v14 }
  0xad   : > { %v439_v16 = vadd.s32 536870912, %v438_v5  ;;  %v1370_v18 = vmul.u32.u64.low %v1304_v43, %v215_v10  ;;  %v1371_v19 = vmul.u32.u64.high %v1304_v43, %v215_v10, %v1370_v18  ;;  %v493_v23 = vsel %vm492_vm11, %v1316_v59, 0 }
  0xae   : > { %v1375_v20 = vmul.u32.u64.low %v1304_v43, %v219_v17  ;;  %v1376_v21 = vmul.u32.u64.high %v1304_v43, %v219_v17, %v1375_v20  ;;  %v1114_v25 = vadd.s32 4294967169, %v1309_v47  ;;  %v495_v28 = vand.u32 31, %v493_v23 }
  0xaf   : > { %v1380_v27 = vshrl.u32 %v439_v16, 30  ;;  %v227_v29 = vmul.u32 %v1304_v43, %v211_v9  ;;  %v1385_v44 = vshll.u32 %v489_v46, 8  ;;  %v1389_v30 = vand.u32 8388607, %v275_v36 }
  0xb0   : > { %v230_v32 = vadd.s32 1, %v1371_v19  ;;  %v494_v59 = vshrl.u32 %v493_v23, 5  ;;  %v496_v33 = vsub.s32 32, %v495_v28  ;;  %vm229_vm12 = vc.u32 %v1376_v21, %v1370_v18 }
  0xb1   : > { %v441_v31 = vshll.u32 %v1380_v27, 30  ;;  %v498_v47 = vshll.u32 %v1235_v49, %v495_v28  ;;  %v501_v43 = vshll.u32 %v1236_v51, %v495_v28  ;;  %v285_v34 = vadd.s32 1, %v1114_v25 }
  0xb2   : > { %v231_v39 = vsel %vm229_vm12, %v230_v32, %v1371_v19  ;;  %v499_v41 = vshrl.u32 %v1236_v51, %v496_v33  ;;  %v504_v42 = vshll.u32 %v1237_v53, %v495_v28  ;;  %v502_v50 = vshrl.u32 %v1237_v53, %v496_v33 }
  0xb3   : > { %v1397_v46 = vsub.s32 %v438_v5, %v441_v31  ;;  %v232_v48 = vadd.s32 %v231_v39, %v227_v29  ;;  %v505_v40 = vshrl.u32 %v1238_v55, %v496_v33  ;;  %v507_v52 = vshll.u32 %v1238_v55, %v495_v28 }
  0xb4   : > { %v500_v56 = vor.u32 %v499_v41, %v498_v47  ;;  %v508_v58 = vshrl.u32 %v1239_v57, %v496_v33  ;;  %v510_v60 = vshll.u32 %v1239_v57, %v495_v28  ;;  %v503_v62 = vor.u32 %v502_v50, %v501_v43 }
  0xb5   : > { %v444_v54 = vsub.s32 0, %v1397_v46  ;;  %v233_v61 = vadd.s32 536870912, %v232_v48  ;;  %v506_v38 = vor.u32 %v505_v40, %v504_v42  ;;  %v511_v63 = vshrl.u32 %v1240_v1, %v496_v33 }
  0xb6   : > { %v497_v2 = vshrl.u32 %v1235_v49, %v496_v33  ;;  %v509_v45 = vor.u32 %v508_v58, %v507_v52  ;;  %vm513_vm13 = vcmp.lt.s32.totalorder %v494_v59, 1  ;;  %vm515_vm14 = vcmp.lt.s32.totalorder %v494_v59, 3 }
  0xb7   : > { %v1119_v0 = vmin.u32 %v444_v54, %v1397_v46  ;;  %v1411_v3 = vshrl.u32 %v233_v61, 30  ;;  %v512_v4 = vor.u32 %v511_v63, %v510_v60  ;;  %vm516_vm15 = vcmp.lt.s32.totalorder %v494_v59, 4 }
  0xb8   : > { %v517_v6 = vsel %vm513_vm13, %v497_v2, %v500_v56  ;;  %v518_v7 = vsel %vm516_vm15, %v506_v38, 2102212464  ;;  %v521_v8 = vsel %vm513_vm13, %v500_v56, %v503_v62  ;;  %v522_v14 = vsel %vm516_vm15, %v509_v45, 920167782 }
  0xb9   : > { %v446_v5 = vclz %v1119_v0  ;;  %v235_v9 = vshll.u32 %v1411_v3, 30  ;;  %v519_v10 = vsel %vm515_vm14, %v503_v62, %v518_v7  ;;  %v525_v16 = vsel %vm513_vm13, %v503_v62, %v506_v38 }
  0xba   : > { %vm514_vm0 = vcmp.lt.s32.totalorder %v494_v59, 2  ;;  %v523_v19 = vsel %vm515_vm14, %v506_v38, %v522_v14  ;;  %v526_v20 = vsel %vm516_vm15, %v512_v4, 1326507024  ;;  %v434_v42 = vadd.s32 %v1343_v37, %v1340_v35 }
  0xbb   : > { %v1120_v17 = vadd.s32 4294967294, %v446_v5  ;;  %v1416_v23 = vsub.s32 %v232_v48, %v235_v9  ;;  %v520_v25 = vsel %vm514_vm0, %v517_v6, %v519_v10  ;;  %v524_v28 = vsel %vm514_vm0, %v521_v8, %v523_v19 }
  0xbc   : > { %v527_v29 = vsel %vm515_vm14, %v509_v45, %v526_v20  ;;  %v1420_v32 = vmul.u32.u64.low %v1385_v44, %v524_v28  ;;  %v1421_v33 = vmul.u32.u64.high %v1385_v44, %v524_v28, %v1420_v32  ;;  %vm286_vm2 = vcmp.gt.s32.totalorder %v285_v34, 0 }
  0xbd   : > { %vm1121_vm1 = vcmp.lt.s32.totalorder %v1120_v17, 0  ;;  %v528_v31 = vsel %vm514_vm0, %v525_v16, %v527_v29  ;;  %v238_v43 = vsub.s32 0, %v1416_v23  ;;  %v536_v40 = vmul.u32 %v1385_v44, %v520_v25 }
  0xbe   : > { %v449_v47 = vsel %vm1121_vm1, 0, %v1120_v17  ;;  %v1426_v39 = vmul.u32.u64.low %v1385_v44, %v528_v31  ;;  %v1427_v41 = vmul.u32.u64.high %v1385_v44, %v528_v31, %v1426_v39  ;;  %v283_v52 = vor.u32 8388608, %v1389_v30 }
  0xbf   : > { %v450_v48 = vsub.s32 32, %v449_v47  ;;  %v454_v59 = vsub.s32 4294967266, %v449_v47  ;;  %v1111_v50 = vmin.u32 %v238_v43, %v1416_v23  ;;  %v287_v54 = vsel %vm286_vm2, %v285_v34, 0 }
  0xc0   : > { %v451_v56 = vshll.u32 %v1397_v46, %v449_v47  ;;  %v539_v61 = vadd.s32 1, %v1421_v33  ;;  %vm538_vm3 = vc.u32 %v1427_v41, %v1420_v32  ;;  %v1438_v35 = vshrl.u32 %v287_v54, 5 }
  0xc1   : > { %v452_v58 = vshrl.u32 %v434_v42, %v450_v48  ;;  %v455_v60 = vadd.s32 127, %v454_v59  ;;  %v240_v62 = vclz %v1111_v50  ;;  %v289_v37 = vand.u32 31, %v287_v54 }
  0xc2   : > { %v540_v44 = vsel %vm538_vm3, %v539_v61, %v1421_v33  ;;  %v228_v30 = vadd.s32 %v1370_v18, %v1376_v21  ;;  %v1444_v5 = vshll.u32 %v283_v52, 8  ;;  %vm307_vm5 = vcmp.lt.s32.totalorder %v1438_v35, 1 }
  0xc3   : > { %v453_v38 = vor.u32 %v452_v58, %v451_v56  ;;  %v456_v63 = vshll.u32 %v455_v60, 23  ;;  %v1112_v34 = vadd.s32 4294967294, %v240_v62  ;;  %v541_v46 = vadd.s32 %v540_v44, %v536_v40 }
  0xc4   : > { %v290_v0 = vsub.s32 32, %v289_v37  ;;  %v292_v4 = vshll.u32 %v1235_v49, %v289_v37  ;;  %v295_v8 = vshll.u32 %v1236_v51, %v289_v37  ;;  %v298_v21 = vshll.u32 %v1237_v53, %v289_v37 }
  0xc5   : > { %v457_v2 = vor.u32 4788187, %v456_v63  ;;  %v460_v45 = vcvt.s32.f32 %v453_v38  ;;  %vm1113_vm4 = vcmp.lt.s32.totalorder %v1112_v34, 0  ;;  %v542_v6 = vadd.s32 536870912, %v541_v46 }
  0xc6   : > { %v293_v7 = vshrl.u32 %v1236_v51, %v290_v0  ;;  %v243_v9 = vsel %vm1113_vm4, 0, %v1112_v34  ;;  %v296_v18 = vshrl.u32 %v1237_v53, %v290_v0  ;;  %v299_v10 = vshrl.u32 %v1238_v55, %v290_v0 }
  0xc7   : > { %v458_v14 = vand.u32 2147483647, %v457_v2  ;;  %v244_v16 = vsub.s32 32, %v243_v9  ;;  %v248_v17 = vsub.s32 4294967266, %v243_v9  ;;  %v1452_v19 = vshrl.u32 %v542_v6, 30 }
  0xc8   : > { %v245_v20 = vshll.u32 %v1416_v23, %v243_v9  ;;  %v291_v25 = vshrl.u32 %v1235_v49, %v290_v0  ;;  %v294_v28 = vor.u32 %v293_v7, %v292_v4  ;;  %v297_v51 = vor.u32 %v296_v18, %v295_v8 }
  0xc9   : > { %v246_v29 = vshrl.u32 %v228_v30, %v244_v16  ;;  %v249_v31 = vadd.s32 127, %v248_v17  ;;  %v544_v33 = vshll.u32 %v1452_v19, 30  ;;  %v300_v47 = vor.u32 %v299_v10, %v298_v21 }
  0xca   : > { %v301_v53 = vshll.u32 %v1238_v55, %v289_v37  ;;  %v302_v43 = vshrl.u32 %v1239_v57, %v290_v0  ;;  %v304_v39 = vshll.u32 %v1239_v57, %v289_v37  ;;  %v305_v42 = vshrl.u32 %v1240_v1, %v290_v0 }
  0xcb   : > { %v461_v48 = vmul.f32 %v460_v45, %v458_v14  ;;  %v247_v59 = vor.u32 %v246_v29, %v245_v20  ;;  %v250_v23 = vshll.u32 %v249_v31, 23  ;;  %v545_v50 = vsub.s32 %v541_v46, %v544_v33 }
  0xcc   : > { %v303_v49 = vor.u32 %v302_v43, %v301_v53  ;;  %v306_v40 = vor.u32 %v305_v42, %v304_v39  ;;  %vm308_vm6 = vcmp.lt.s32.totalorder %v1438_v35, 2  ;;  %vm309_vm7 = vcmp.lt.s32.totalorder %v1438_v35, 3 }
  0xcd   : > { %v251_v52 = vor.u32 4788187, %v250_v23  ;;  %v254_v54 = vcvt.s32.f32 %v247_v59  ;;  %v547_v56 = vsub.s32 0, %v545_v50  ;;  %vm310_vm8 = vcmp.lt.s32.totalorder %v1438_v35, 4 }
  0xce   : > { %v311_v55 = vsel %vm307_vm5, %v291_v25, %v294_v28  ;;  %v312_v57 = vsel %vm310_vm8, %v300_v47, 2102212464  ;;  %v315_v1 = vsel %vm307_vm5, %v294_v28, %v297_v51  ;;  %v316_v58 = vsel %vm310_vm8, %v303_v49, 920167782 }
  0xcf   : > { %v252_v60 = vand.u32 2147483647, %v251_v52  ;;  %v1123_v61 = vmin.u32 %v547_v56, %v545_v50  ;;  %v313_v62 = vsel %vm309_vm7, %v297_v51, %v312_v57  ;;  %v317_v37 = vsel %vm309_vm7, %v300_v47, %v316_v58 }
  0xd0   : > { %v318_v38 = vsel %vm308_vm6, %v315_v1, %v317_v37  ;;  %v319_v63 = vsel %vm307_vm5, %v297_v51, %v300_v47  ;;  %v320_v44 = vsel %vm310_vm8, %v306_v40, 1326507024  ;;  %v258_v30 = vsub.s32 4, %v1411_v3 }
  0xd1   : > { %v462_v34 = vxor.u32 2147483648, %v461_v48  ;;  %v255_v46 = vmul.f32 %v254_v54, %v252_v60  ;;  %v549_v0 = vclz %v1123_v61  ;;  %v321_v2 = vsel %vm309_vm7, %v303_v49, %v320_v44 }
  0xd2   : > { %v314_v45 = vsel %vm308_vm6, %v311_v55, %v313_v62  ;;  %v322_v4 = vsel %vm308_vm6, %v319_v63, %v321_v2  ;;  %v1484_v6 = vmul.u32.u64.low %v1444_v5, %v318_v38  ;;  %v1485_v7 = vmul.u32.u64.high %v1444_v5, %v318_v38, %v1484_v6 }
  0xd3   : > { %v256_v8 = vxor.u32 2147483648, %v255_v46  ;;  %v1124_v9 = vadd.s32 4294967294, %v549_v0  ;;  %v1488_v18 = vmul.u32.u64.low %v1444_v5, %v322_v4  ;;  %v1489_v21 = vmul.u32.u64.high %v1444_v5, %v322_v4, %v1488_v18 }
  0xd4   : > { %vm380_vm9 = vcmp.lt.s32.totalorder %v1278_v11, 0  ;;  %vm174_vm10 = vcmp.lt.s32.totalorder %v1280_v12, 0  ;;  %vm1495_vm11 = vcmp.le.f32.partialorder %v172_v15, 0.7853982  ;;  %vm1501_vm12 = vcmp.le.f32.partialorder %v378_v13, 0.7853982 }
  0xd5   : > { %v463_v14 = vsel %vm380_vm9, %v462_v34, %v461_v48  ;;  %v257_v16 = vsel %vm174_vm10, %v256_v8, %v255_v46  ;;  %v537_v17 = vadd.s32 %v1420_v32, %v1427_v41  ;;  %vm1125_vm13 = vcmp.lt.s32.totalorder %v1124_v9, 0 }
  0xd6   : > { %v552_v20 = vsel %vm1125_vm13, 0, %v1124_v9  ;;  %v330_v15 = vmul.u32 %v1444_v5, %v314_v45  ;;  %v333_v25 = vadd.s32 1, %v1485_v7  ;;  %v260_v13 = vsel %vm1495_vm11, %v1280_v12, %v257_v16 }
  0xd7   : > { %v553_v28 = vsub.s32 32, %v552_v20  ;;  %v557_v51 = vsub.s32 4294967266, %v552_v20  ;;  %v259_v29 = vsel %vm174_vm10, %v258_v30, %v1411_v3  ;;  %v464_v31 = vsub.s32 4, %v1380_v27 }
  0xd8   : > { %v554_v33 = vshll.u32 %v545_v50, %v552_v20  ;;  %vm332_vm14 = vc.u32 %v1489_v21, %v1484_v6  ;;  %1194 = vcosq.f32 %v260_v13  ;;  %v466_v32 = vsel %vm1501_vm12, %v1278_v11, %v463_v14 }
  0xd9   : > { %v555_v41 = vshrl.u32 %v537_v17, %v553_v28  ;;  %v558_v5 = vadd.s32 127, %v557_v51  ;;  %v334_v47 = vsel %vm332_vm14, %v333_v25, %v1485_v7  ;;  %1196 = vsinq.f32 %v260_v13 }
  0xda   : > { %v335_v53 = vadd.s32 %v334_v47, %v330_v15  ;;  %v261_v43 = vsel %vm1495_vm11, 0, %v259_v29  ;;  %1198 = vcosq.f32 %v466_v32  ;;  %v465_v48 = vsel %vm380_vm9, %v464_v31, %v1380_v27 }
  0xdb   : > { %v556_v3 = vor.u32 %v555_v41, %v554_v33  ;;  %v559_v39 = vshll.u32 %v558_v5, 23  ;;  %v682_v23 = vadd.s32 3, %v261_v43  ;;  %1200 = vsinq.f32 %v466_v32 }
  0xdc   : > { %v336_v42 = vadd.s32 536870912, %v335_v53  ;;  %v467_v52 = vsel %vm1501_vm12, 0, %v465_v48  ;;  %v265_v56 = vand.u32 3, %v261_v43  ;;  %vm264_vm15 = vweird.f32 %v1280_v12 }
  0xdd   : > { %v560_v59 = vor.u32 4788187, %v559_v39  ;;  %v563_v40 = vcvt.s32.f32 %v556_v3  ;;  %v683_v57 = vand.u32 3, %v682_v23  ;;  %vm584_vm0 = vcmask 31744  }
  0xde   : > { %v1526_v50 = vshrl.u32 %v336_v42, 30  ;;  %v890_v27 = vadd.s32 3, %v467_v52  ;;  %vm483_vm1 = vcmp.lt.s32.totalorder %v1290_v22, 0  ;;  %v471_v60 = vand.u32 3, %v467_v52 }
  0xdf   : > { %v561_v49 = vand.u32 2147483647, %v560_v59  ;;  %vm1537_vm2 = vcmp.le.f32.partialorder %v481_v26, 0.7853982  ;;  %v331_v62 = vadd.s32 %v1484_v6, %v1489_v21  ;;  %vm266_vm3 = vcmp.lt.s32.totalorder %v265_v56, 2 }
  0xe0   : > { %v338_v54 = vshll.u32 %v1526_v50, 30  ;;  %v567_v38 = vsub.s32 4, %v1452_v19  ;;  %vm267_vm4 = vcmp.eq.s32.totalorder %v265_v56, 0  ;;  %vm270_vm5 = vcmp.eq.s32.totalorder %v265_v56, 2 }
  0xe1   : > { %v564_v55 = vmul.f32 %v563_v40, %v561_v49  ;;  %vm684_vm6 = vcmp.lt.s32.totalorder %v683_v57, 2  ;;  %vm470_vm7 = vweird.f32 %v1278_v11  ;;  %v891_v46 = vand.u32 3, %v890_v27 }
  0xe2   : > { %v1531_v1 = vsub.s32 %v335_v53, %v338_v54  ;;  %vm685_vm8 = vcmp.eq.s32.totalorder %v683_v57, 0  ;;  %vm688_vm9 = vcmp.eq.s32.totalorder %v683_v57, 2  ;;  %vm472_vm10 = vcmp.lt.s32.totalorder %v471_v60, 2 }
  0xe3   : > { %v565_v58 = vxor.u32 2147483648, %v564_v55  ;;  %vm476_vm11 = vcmp.eq.s32.totalorder %v471_v60, 2  ;;  %vm896_vm12 = vcmp.eq.s32.totalorder %v891_v46, 2  ;;  %vm473_vm14 = vcmp.eq.s32.totalorder %v471_v60, 0 }
  0xe4   : > { %v341_v37 = vsub.s32 0, %v1531_v1  ;;  %v568_v41 = vsel %vm483_vm1, %v567_v38, %v1452_v19  ;;  %v361_v11 = vsub.s32 4, %v1526_v50 }
  0xe5   : > { %v1195_v63 = vpop.eup %1194  ;;  %v566_v44 = vsel %vm483_vm1, %v565_v58, %v564_v55  ;;  %v570_v42 = vsel %vm1537_vm2, 0, %v568_v41 }
  0xe6   : > { %v1197_v30 = vpop.eup %1196  ;;  %v1115_v26 = vmin.u32 %v341_v37, %v1531_v1  ;;  %v271_v34 = vxor.u32 2147483648, %v1195_v63  ;;  %v569_v0 = vsel %vm1537_vm2, %v1290_v22, %v566_v44  ;;  %v574_v49 = vand.u32 3, %v570_v42 }
  0xe7   : > { %v268_v2 = vxor.u32 2147483648, %v1197_v30  ;;  %v1199_v45 = vpop.eup %1198  ;;  %1202 = vcosq.f32 %v569_v0  ;;  %vm276_vm2 = vcmp.le.f32.partialorder %v275_v36, 0.7853982  ;;  %v994_v36 = vadd.s32 3, %v570_v42 }
  0xe8   : > { %v343_v4 = vclz %v1115_v26  ;;  %v690_v6 = vsel %vm688_vm9, %v271_v34, %v1197_v30  ;;  %v272_v7 = vsel %vm270_vm5, %v271_v34, %v1197_v30  ;;  %v477_v18 = vxor.u32 2147483648, %v1199_v45  ;;  %v1201_v21 = vpop.eup %1200 }
  0xe9   : > { %v687_v8 = vsel %vm685_vm8, %v1195_v63, %v268_v2  ;;  %v269_v9 = vsel %vm267_vm4, %v1195_v63, %v268_v2  ;;  %v474_v20 = vxor.u32 2147483648, %v1201_v21  ;;  %vm893_vm4 = vcmp.eq.s32.totalorder %v891_v46, 0 }
  0xea   : > { %v1116_v10 = vadd.s32 4294967294, %v343_v4  ;;  %v691_v35 = vsel %vm684_vm6, %v687_v8, %v690_v6  ;;  %v273_v14 = vsel %vm266_vm3, %v269_v9, %v272_v7  ;;  %v478_v15 = vsel %vm476_vm11, %v477_v18, %v1201_v21 }
  0xeb   : > { %v692_v16 = vsel %vm264_vm15, nan, %v691_v35  ;;  %v274_v17 = vsel %vm264_vm15, nan, %v273_v14  ;;  %v898_v25 = vsel %vm896_vm12, %v477_v18, %v1201_v21  ;;  %v475_v28 = vsel %vm473_vm14, %v1199_v45, %v474_v20 }
  0xec   : > { %vm1117_vm13 = vcmp.lt.s32.totalorder %v1116_v10, 0  ;;  %1009 = vrot.lane.b32.xlu0 %v692_v16, %s1241_s18  ;;  %585 = vst.msk [vmem:[%s1556_s17] sm:$0xff] %vm584_vm0, %v274_v17  ;;  %v895_v51 = vsel %vm893_vm4, %v1199_v45, %v474_v20  ;;  %1204 = vsinq.f32 %v569_v0  ;;  %v479_v12 = vsel %vm472_vm10, %v475_v28, %v478_v15 }
  0xed   : > { %v346_v13 = vsel %vm1117_vm13, 0, %v1116_v10  ;;  %vm892_vm15 = vcmp.lt.s32.totalorder %v891_v46, 2  ;;  %v480_v33 = vsel %vm470_vm7, nan, %v479_v12  ;;  %vm579_vm1 = vcmp.eq.s32.totalorder %v574_v49, 2 }
  0xee   : > { %v347_v29 = vsub.s32 32, %v346_v13  ;;  %v351_v31 = vsub.s32 4294967266, %v346_v13  ;;  %v899_v32 = vsel %vm892_vm15, %v895_v51, %v898_v25  ;;  %v348_v5 = vshll.u32 %v1531_v1, %v346_v13  ;;  %587 = vst.msk [vmem:[%s1556_s17 + $0x10] sm:$0xff] %vm584_vm0, %v480_v33 }
  0xef   : > { %v900_v43 = vsel %vm470_vm7, nan, %v899_v32  ;;  %vm277_vm3 = vcmp.lt.s32.totalorder %v1292_v24, 0  ;;  %vm576_vm5 = vcmp.eq.s32.totalorder %v574_v49, 0  ;;  %vm575_vm6 = vcmp.lt.s32.totalorder %v574_v49, 2 }
  0xf0   : > { %v349_v47 = vshrl.u32 %v331_v62, %v347_v29  ;;  %v352_v53 = vadd.s32 127, %v351_v31  ;;  %1013 = vrot.lane.b32.xlu0 %v900_v43, %s1241_s18  ;;  %vm573_vm7 = vweird.f32 %v1290_v22  ;;  %v362_v61 = vsel %vm277_vm3, %v361_v11, %v1526_v50 }
  0xf1   : > { %v364_v37 = vsel %vm276_vm2, 0, %v362_v61  ;;  %v995_v30 = vand.u32 3, %v994_v36  ;;  %vm367_vm15 = vweird.f32 %v1292_v24 }
  0xf2   : > { %v350_v3 = vor.u32 %v349_v47, %v348_v5  ;;  %v353_v39 = vshll.u32 %v352_v53, 23  ;;  %v786_v38 = vadd.s32 3, %v364_v37  ;;  %v368_v63 = vand.u32 3, %v364_v37 }
  0xf3   : > { %vm997_vm14 = vcmp.eq.s32.totalorder %v995_v30, 0  ;;  %vm1000_vm4 = vcmp.eq.s32.totalorder %v995_v30, 2 }
  0xf4   : > { %v354_v48 = vor.u32 4788187, %v353_v39  ;;  %v1203_v59 = vpop.eup %1202  ;;  %v357_v19 = vcvt.s32.f32 %v350_v3  ;;  %v787_v44 = vand.u32 3, %v786_v38  ;;  %vm369_vm8 = vcmp.lt.s32.totalorder %v368_v63, 2 }
  0xf5   : > { %v580_v40 = vxor.u32 2147483648, %v1203_v59  ;;  %vm370_vm9 = vcmp.eq.s32.totalorder %v368_v63, 0  ;;  %vm373_vm10 = vcmp.eq.s32.totalorder %v368_v63, 2 }
  0xf6   : > { %v355_v23 = vand.u32 2147483647, %v354_v48  ;;  %vm788_vm11 = vcmp.lt.s32.totalorder %v787_v44, 2  ;;  %vm789_vm12 = vcmp.eq.s32.totalorder %v787_v44, 0  ;;  %vm792_vm13 = vcmp.eq.s32.totalorder %v787_v44, 2 }
  0xf8   : > { %v358_v52 = vmul.f32 %v357_v19, %v355_v23 }
  0xf9   : > { %v1205_v54 = vpop.eup %1204 }
  0xfa   : > { %v359_v56 = vxor.u32 2147483648, %v358_v52  ;;  %v577_v55 = vxor.u32 2147483648, %v1205_v54  ;;  %v581_v57 = vsel %vm579_vm1, %v580_v40, %v1205_v54  ;;  %v1002_v7 = vsel %vm1000_vm4, %v580_v40, %v1205_v54 }
  0xfb   : > { %vm996_vm1 = vcmp.lt.s32.totalorder %v995_v30, 2 }
  0xfc   : > { %v360_v1 = vsel %vm277_vm3, %v359_v56, %v358_v52  ;;  %v578_v58 = vsel %vm576_vm5, %v1203_v59, %v577_v55  ;;  %v999_v6 = vsel %vm997_vm14, %v1203_v59, %v577_v55  ;;  %vm1021_vm3 = vcmask 64544  }
  0xfd   : > { %v363_v27 = vsel %vm276_vm2, %v1292_v24, %v360_v1  ;;  %v582_v60 = vsel %vm575_vm6, %v578_v58, %v581_v57  ;;  %v1003_v10 = vsel %vm996_vm1, %v999_v6, %v1002_v7 }
  0xfe   : > { %1206 = vcosq.f32 %v363_v27  ;;  %v583_v62 = vsel %vm573_vm7, nan, %v582_v60  ;;  %v1004_v35 = vsel %vm573_vm7, nan, %v1003_v10 }
  0xff   : > { %1208 = vsinq.f32 %v363_v27  ;;  %588 = vst.msk [vmem:[%s1556_s17 + $0x18] sm:$0xff] %vm584_vm0, %v583_v62 }
 0x10b   : > { %v1207_v26 = vpop.eup %1206 }
 0x10c   : > { %v1209_v34 = vpop.eup %1208  ;;  %v374_v46 = vxor.u32 2147483648, %v1207_v26 }
 0x10d   : > { %v371_v0 = vxor.u32 2147483648, %v1209_v34 }
 0x10e   : > { %v794_v50 = vsel %vm792_vm13, %v374_v46, %v1209_v34  ;;  %v375_v2 = vsel %vm373_vm10, %v374_v46, %v1209_v34 }
 0x10f   : > { %v791_v45 = vsel %vm789_vm12, %v1207_v26, %v371_v0  ;;  %v372_v4 = vsel %vm370_vm9, %v1207_v26, %v371_v0 }
 0x110   : > { %v795_v8 = vsel %vm788_vm11, %v791_v45, %v794_v50  ;;  %v376_v9 = vsel %vm369_vm8, %v372_v4, %v375_v2 }
 0x111   : > { %v796_v18 = vsel %vm367_vm15, nan, %v795_v8  ;;  %v377_v21 = vsel %vm367_vm15, nan, %v376_v9 }
 0x112   : > { %1011 = vrot.lane.b32.xlu1 %v796_v18, %s1241_s18  ;;  %586 = vst.msk [vmem:[%s1556_s17 + $0x8] sm:$0xff] %vm584_vm0, %v377_v21 }
 0x116   : > { %1015 = vrot.lane.b32.xlu1 %v1004_v35, %s1241_s18 }
 0x15e   : > { %v1010_v24 = vpop.permute.xlu0 %1009 }
 0x15f   : > { %1022 = vst.msk [vmem:[%s1556_s17] sm:$0xff] %vm1021_vm3, %v1010_v24 }
 0x162   : > { %v1014_v14 = vpop.permute.xlu0 %1013 }
 0x163   : > { %1024 = vst.msk [vmem:[%s1556_s17 + $0x10] sm:$0xff] %vm1021_vm3, %v1014_v14 }
 0x184   : > { %v1012_v16 = vpop.permute.xlu1 %1011 }
 0x185   : > { %1023 = vst.msk [vmem:[%s1556_s17 + $0x8] sm:$0xff] %vm1021_vm3, %v1012_v16 }
 0x188   : > { %v1016_v17 = vpop.permute.xlu1 %1015 }
 0x189   : > { %1025 = vst.msk [vmem:[%s1556_s17 + $0x18] sm:$0xff] %vm1021_vm3, %v1016_v17 }
 0x18a PF: > { %s11_s8 = sadd.s32 1, %s1232_s8   ;;  %s1622_s6 = smov %s1228_s7 }
 0x18b   : > { %p8_p5 = scmp.ge.s32.totalorder %s11_s8, 10   ;;  %s1623_s7 = smov %s1625_s9 }
 0x18d   :  { %10 = sbr.rel (!%p8_p5) target bundleno = 2 (0x2), region = 54 }

</bundles_post_ra>
